<compile_context>
chip_gen: v5e
topology: v5e:2x2
jax: 0.10.0
libtpu: 0.0.40
codegen_flags: <defaults>
</compile_context>

<pallas_src>
import jax
import jax.numpy as jnp
import numpy as np
from jax import lax
from jax.experimental import pallas as pl
from jax.experimental.pallas import tpu as pltpu


def lstm_kernel(x_ref, wih_ref, whh_ref, b_ref, wfc_ref, bfc_ref,
                y_ref, hc_ref,
                xw_sc, h_all_sc):
    B = hc_ref.shape[0] // 2
    H = hc_ref.shape[1]
    TB = x_ref.shape[0]
    T = TB // B

    # ---- Phase 1: batched input projection for all timesteps (one MXU pass),
    #      with the combined LSTM bias folded in.  Result goes to VMEM scratch so
    #      it does not occupy vregs across the serial recurrence.
    xw_sc[...] = (jnp.dot(x_ref[...], wih_ref[...],
                          preferred_element_type=jnp.float32)
                  + b_ref[...])                                  # (T*B, 4H)

    whh = whh_ref[...]                                           # hoist weight load

    # ---- Phase 2: serial recurrence.  lax.fori_loop(unroll=True) bounds per-step
    #      live ranges while keeping the loop visible to the scheduler.
    #      PyTorch gate order: i, f, g, o.
    def step(t, carry):
        h, c = carry
        row = t * B
        if B % 8 == 0:                                           # trace-time check
            row = pl.multiple_of(row, 8)                         # aligned sublane offset
        # Per-step gate pre-activations: one (B,H)x(H,4H) MXU op + a VMEM slice load.
        gates = xw_sc[pl.ds(row, B), :] + jnp.dot(
            h, whh, preferred_element_type=jnp.float32)          # (B, 4H)
        # Full-vreg activations: one sigmoid + one tanh over the whole 128-lane vreg.
        sig = jax.nn.sigmoid(gates)
        tah = jnp.tanh(gates)
        i_g = sig[:, 0 * H:1 * H]
        f_g = sig[:, 1 * H:2 * H]
        g_g = tah[:, 2 * H:3 * H]
        o_g = sig[:, 3 * H:4 * H]
        c_new = f_g * c + i_g * g_g
        h_new = o_g * jnp.tanh(c_new)
        h_all_sc[pl.ds(row, B), :] = h_new                       # stash for FC head
        return (h_new, c_new)

    h0 = jnp.zeros((B, H), jnp.float32)
    c0 = jnp.zeros((B, H), jnp.float32)
    h, c = lax.fori_loop(0, T, step, (h0, c0), unroll=True)

    # Final hidden/cell state packed into one output stream (rows [0:B]=h, [B:2B]=c).
    hc_ref[0:B, :] = h.astype(hc_ref.dtype)
    hc_ref[B:2 * B, :] = c.astype(hc_ref.dtype)

    # ---- Phase 3: batched FC head over all timesteps, single slab store.
    y_ref[...] = (jnp.dot(h_all_sc[...], wfc_ref[...],
                          preferred_element_type=jnp.float32)
                  + bfc_ref[...]).astype(y_ref.dtype)


def lstm_forward(x, params):
    """x: (T, B, I) float32. Returns (output (T,B,O), (h_n (1,B,H), c_n (1,B,H)))."""
    T, B, I = x.shape
    w_ih, w_hh, b_ih, b_hh, w_fc, b_fc = params
    H = w_hh.shape[1]
    O = w_fc.shape[0]

    # Glue (layout prep) in plain JAX; all hot-path math is inside the kernel.
    x2d = x.reshape(T * B, I)                   # time-major flattening (free reshape)
    wih_t = jnp.transpose(w_ih)                 # (I, 4H)
    whh_t = jnp.transpose(w_hh)                 # (H, 4H)
    b = (b_ih + b_hh).reshape(1, 4 * H)         # combined bias (1, 4H)
    wfc_t = jnp.transpose(w_fc)                 # (H, O)
    bfc = b_fc.reshape(1, O)                    # (1, O)

    grid_spec = pltpu.PrefetchScalarGridSpec(
        num_scalar_prefetch=0,
        grid=(1,),                              # whole recurrence in one invocation
        in_specs=[
            pl.BlockSpec((T * B, I), lambda i: (0, 0)),       # x (all timesteps)
            pl.BlockSpec((I, 4 * H), lambda i: (0, 0)),       # W_ih^T
            pl.BlockSpec((H, 4 * H), lambda i: (0, 0)),       # W_hh^T
            pl.BlockSpec((1, 4 * H), lambda i: (0, 0)),       # combined bias
            pl.BlockSpec((H, O), lambda i: (0, 0)),           # W_fc^T
            pl.BlockSpec((1, O), lambda i: (0, 0)),           # b_fc
        ],
        out_specs=[
            pl.BlockSpec((T * B, O), lambda i: (0, 0)),       # y slab
            pl.BlockSpec((2 * B, H), lambda i: (0, 0)),       # packed [h_n; c_n]
        ],
        scratch_shapes=[
            pltpu.VMEM((T * B, 4 * H), jnp.float32),          # xw slab (input proj)
            pltpu.VMEM((T * B, H), jnp.float32),              # stacked h_t for FC head
        ],
    )

    out_shapes = (
        jax.ShapeDtypeStruct((T * B, O), jnp.float32),
        jax.ShapeDtypeStruct((2 * B, H), jnp.float32),
    )

    y2d, hc = pl.pallas_call(
        lstm_kernel,
        out_shape=out_shapes,
        grid_spec=grid_spec,
        compiler_params=pltpu.CompilerParams(
            dimension_semantics=("arbitrary",),
            vmem_limit_bytes=32 * 1024 * 1024),
    )(x2d, wih_t, whh_t, b, wfc_t, bfc)

    y = y2d.reshape(T, B, O)
    h_n = hc[:B][None]
    c_n = hc[B:][None]
    return y, (h_n, c_n)


def lstm_reference(x, params):
    """Pure-JAX reference matching torch.nn.LSTM(num_layers=1) + Linear."""
    w_ih, w_hh, b_ih, b_hh, w_fc, b_fc = params
    T, B, I = x.shape
    H = w_hh.shape[1]

    def step(carry, x_t):
        h, c = carry
        gates = x_t @ w_ih.T + b_ih + h @ w_hh.T + b_hh
        i_g = jax.nn.sigmoid(gates[:, 0 * H:1 * H])
        f_g = jax.nn.sigmoid(gates[:, 1 * H:2 * H])
        g_g = jnp.tanh(gates[:, 2 * H:3 * H])
        o_g = jax.nn.sigmoid(gates[:, 3 * H:4 * H])
        c_new = f_g * c + i_g * g_g
        h_new = o_g * jnp.tanh(c_new)
        return (h_new, c_new), h_new

    h0 = jnp.zeros((B, H), jnp.float32)
    c0 = jnp.zeros((B, H), jnp.float32)
    (h_n, c_n), hs = lax.scan(step, (h0, c0), x)
    y = hs @ w_fc.T + b_fc
    return y, (h_n[None], c_n[None])


def init_params(key, input_size, hidden_size, output_size):
    """Deterministic init mimicking PyTorch's uniform(-1/sqrt(H), 1/sqrt(H))."""
    ks = jax.random.split(key, 6)
    k = 1.0 / np.sqrt(hidden_size)
    u = lambda kk, shape: jax.random.uniform(kk, shape, jnp.float32, -k, k)
    w_ih = u(ks[0], (4 * hidden_size, input_size))
    w_hh = u(ks[1], (4 * hidden_size, hidden_size))
    b_ih = u(ks[2], (4 * hidden_size,))
    b_hh = u(ks[3], (4 * hidden_size,))
    w_fc = u(ks[4], (output_size, hidden_size))
    b_fc = u(ks[5], (output_size,))
    return (w_ih, w_hh, b_ih, b_hh, w_fc, b_fc)


if __name__ == "__main__":
    # Small shapes consistent with the module: char-level LSTM.
    input_size = 32    # vocab / one-hot size
    hidden_size = 32
    output_size = 32
    batch_size = 8
    seq_len = 8

    key = jax.random.PRNGKey(0)
    kx, kp = jax.random.split(key)
    x = jax.random.normal(kx, (seq_len, batch_size, input_size), jnp.float32)
    params = init_params(kp, input_size, hidden_size, output_size)

    y, (h_n, c_n) = lstm_forward(x, params)
    jax.block_until_ready((y, h_n, c_n))

    y_ref, (h_ref, c_ref) = lstm_reference(x, params)
    np.testing.assert_allclose(np.asarray(y), np.asarray(y_ref), atol=1e-5, rtol=1e-5)
    np.testing.assert_allclose(np.asarray(h_n), np.asarray(h_ref), atol=1e-5, rtol=1e-5)
    np.testing.assert_allclose(np.asarray(c_n), np.asarray(c_ref), atol=1e-5, rtol=1e-5)

    print("KERNEL_OK")
</pallas_src>

<mosaic_0001>
module attributes {stable_mosaic.version = 11 : i64} {
  func.func @lstm_kernel(%arg0: i32, %arg1: memref<64x32xf32, #tpu.memory_space<vmem>>, %arg2: memref<32x128xf32, #tpu.memory_space<vmem>>, %arg3: memref<32x128xf32, #tpu.memory_space<vmem>>, %arg4: memref<1x128xf32, #tpu.memory_space<vmem>>, %arg5: memref<32x32xf32, #tpu.memory_space<vmem>>, %arg6: memref<1x32xf32, #tpu.memory_space<vmem>>, %arg7: memref<64x32xf32, #tpu.memory_space<vmem>>, %arg8: memref<16x32xf32, #tpu.memory_space<vmem>>, %arg9: memref<64x128xf32, #tpu.memory_space<vmem>>, %arg10: memref<64x32xf32, #tpu.memory_space<vmem>>) attributes {dimension_semantics = [#tpu.dimension_semantics<arbitrary>], iteration_bounds = array<i64: 1>, scalar_prefetch = 0 : i64, scratch_operands = 2 : i64, tpu.core_type = #tpu.core_type<tc>, window_params = [{pipeline_mode = #tpu.pipeline_mode<synchronous>, transform_indices = @transform_0, window_bounds = array<i64: 64, 32>}, {pipeline_mode = #tpu.pipeline_mode<synchronous>, transform_indices = @transform_1, window_bounds = array<i64: 32, 128>}, {pipeline_mode = #tpu.pipeline_mode<synchronous>, transform_indices = @transform_2, window_bounds = array<i64: 32, 128>}, {pipeline_mode = #tpu.pipeline_mode<synchronous>, transform_indices = @transform_3, window_bounds = array<i64: 1, 128>}, {pipeline_mode = #tpu.pipeline_mode<synchronous>, transform_indices = @transform_4, window_bounds = array<i64: 32, 32>}, {pipeline_mode = #tpu.pipeline_mode<synchronous>, transform_indices = @transform_5, window_bounds = array<i64: 1, 32>}, {pipeline_mode = #tpu.pipeline_mode<synchronous>, transform_indices = @transform_6, window_bounds = array<i64: 64, 32>}, {pipeline_mode = #tpu.pipeline_mode<synchronous>, transform_indices = @transform_7, window_bounds = array<i64: 16, 32>}]} {
    %c0 = arith.constant 0 : index
    %c0_0 = arith.constant 0 : index
    %0 = vector.load %arg1[%c0, %c0_0] : memref<64x32xf32, #tpu.memory_space<vmem>>, vector<64x32xf32>
    %c0_1 = arith.constant 0 : index
    %c0_2 = arith.constant 0 : index
    %1 = vector.load %arg2[%c0_1, %c0_2] : memref<32x128xf32, #tpu.memory_space<vmem>>, vector<32x128xf32>
    %cst = arith.constant dense<0.000000e+00> : vector<64x128xf32>
    %2 = tpu.matmul %0, %1, %cst {dimension_numbers = #tpu.dot_dimension_numbers<[1], [0], [0], [1], [0, 0, 1, 1], [], []>} : vector<64x32xf32>, vector<32x128xf32>, vector<64x128xf32> -> vector<64x128xf32>
    %c0_3 = arith.constant 0 : index
    %c0_4 = arith.constant 0 : index
    %3 = vector.load %arg4[%c0_3, %c0_4] : memref<1x128xf32, #tpu.memory_space<vmem>>, vector<1x128xf32>
    %4 = vector.broadcast %3 : vector<1x128xf32> to vector<64x128xf32>
    %5 = arith.addf %2, %4 : vector<64x128xf32>
    %c0_5 = arith.constant 0 : index
    %c0_6 = arith.constant 0 : index
    %6 = vector.load %arg9[%c0_5, %c0_6] : memref<64x128xf32, #tpu.memory_space<vmem>>, vector<64x128xf32>
    tpu.vector_store %arg9[%c0_5, %c0_6], %5 {strides = array<i32>} : memref<64x128xf32, #tpu.memory_space<vmem>>, vector<64x128xf32>,
    %c0_7 = arith.constant 0 : index
    %c0_8 = arith.constant 0 : index
    %7 = vector.load %arg3[%c0_7, %c0_8] : memref<32x128xf32, #tpu.memory_space<vmem>>, vector<32x128xf32>
    %cst_9 = arith.constant 0.000000e+00 : f32
    %8 = vector.broadcast %cst_9 : f32 to vector<8x32xf32>
    %cst_10 = arith.constant 0.000000e+00 : f32
    %9 = vector.broadcast %cst_10 : f32 to vector<8x32xf32>
    %c0_i32 = arith.constant 0 : i32
    %c8_i32 = arith.constant 8 : i32
    %10 = arith.muli %c0_i32, %c8_i32 : i32
    %11 = tpu.assume_multiple %10, 8 : i32
    %12 = arith.index_cast %11 : i32 to index
    %c0_11 = arith.constant 0 : index
    %13 = vector.load %arg9[%12, %c0_11] : memref<64x128xf32, #tpu.memory_space<vmem>>, vector<8x128xf32>
    %cst_12 = arith.constant dense<0.000000e+00> : vector<8x128xf32>
    %14 = tpu.matmul %8, %7, %cst_12 {dimension_numbers = #tpu.dot_dimension_numbers<[1], [0], [0], [1], [0, 0, 1, 1], [], []>} : vector<8x32xf32>, vector<32x128xf32>, vector<8x128xf32> -> vector<8x128xf32>
    %15 = arith.addf %13, %14 : vector<8x128xf32>
    %16 = arith.negf %15 : vector<8x128xf32>
    %17 = math.exp %16 : vector<8x128xf32>
    %cst_13 = arith.constant 1.000000e+00 : f32
    %18 = vector.broadcast %cst_13 : f32 to vector<8x128xf32>
    %19 = arith.addf %18, %17 : vector<8x128xf32>
    %20 = arith.divf %18, %19 : vector<8x128xf32>
    %21 = math.tanh %15 : vector<8x128xf32>
    %22 = vector.extract_strided_slice %20 {offsets = [0, 0], sizes = [8, 32], strides = [1, 1]} : vector<8x128xf32> to vector<8x32xf32>
    %23 = vector.extract_strided_slice %20 {offsets = [0, 32], sizes = [8, 32], strides = [1, 1]} : vector<8x128xf32> to vector<8x32xf32>
    %24 = vector.extract_strided_slice %21 {offsets = [0, 64], sizes = [8, 32], strides = [1, 1]} : vector<8x128xf32> to vector<8x32xf32>
    %25 = vector.extract_strided_slice %20 {offsets = [0, 96], sizes = [8, 32], strides = [1, 1]} : vector<8x128xf32> to vector<8x32xf32>
    %26 = arith.mulf %23, %9 : vector<8x32xf32>
    %27 = arith.mulf %22, %24 : vector<8x32xf32>
    %28 = arith.addf %26, %27 : vector<8x32xf32>
    %29 = math.tanh %28 : vector<8x32xf32>
    %30 = arith.mulf %25, %29 : vector<8x32xf32>
    %31 = arith.index_cast %11 : i32 to index
    %c0_14 = arith.constant 0 : index
    %32 = vector.load %arg10[%31, %c0_14] : memref<64x32xf32, #tpu.memory_space<vmem>>, vector<8x32xf32>
    tpu.vector_store %arg10[%31, %c0_14], %30 {strides = array<i32>} : memref<64x32xf32, #tpu.memory_space<vmem>>, vector<8x32xf32>,
    %c1_i32 = arith.constant 1 : i32
    %c8_i32_15 = arith.constant 8 : i32
    %33 = arith.muli %c1_i32, %c8_i32_15 : i32
    %34 = tpu.assume_multiple %33, 8 : i32
    %35 = arith.index_cast %34 : i32 to index
    %c0_16 = arith.constant 0 : index
    %36 = vector.load %arg9[%35, %c0_16] : memref<64x128xf32, #tpu.memory_space<vmem>>, vector<8x128xf32>
    %cst_17 = arith.constant dense<0.000000e+00> : vector<8x128xf32>
    %37 = tpu.matmul %30, %7, %cst_17 {dimension_numbers = #tpu.dot_dimension_numbers<[1], [0], [0], [1], [0, 0, 1, 1], [], []>} : vector<8x32xf32>, vector<32x128xf32>, vector<8x128xf32> -> vector<8x128xf32>
    %38 = arith.addf %36, %37 : vector<8x128xf32>
    %39 = arith.negf %38 : vector<8x128xf32>
    %40 = math.exp %39 : vector<8x128xf32>
    %cst_18 = arith.constant 1.000000e+00 : f32
    %41 = vector.broadcast %cst_18 : f32 to vector<8x128xf32>
    %42 = arith.addf %41, %40 : vector<8x128xf32>
    %43 = arith.divf %41, %42 : vector<8x128xf32>
    %44 = math.tanh %38 : vector<8x128xf32>
    %45 = vector.extract_strided_slice %43 {offsets = [0, 0], sizes = [8, 32], strides = [1, 1]} : vector<8x128xf32> to vector<8x32xf32>
    %46 = vector.extract_strided_slice %43 {offsets = [0, 32], sizes = [8, 32], strides = [1, 1]} : vector<8x128xf32> to vector<8x32xf32>
    %47 = vector.extract_strided_slice %44 {offsets = [0, 64], sizes = [8, 32], strides = [1, 1]} : vector<8x128xf32> to vector<8x32xf32>
    %48 = vector.extract_strided_slice %43 {offsets = [0, 96], sizes = [8, 32], strides = [1, 1]} : vector<8x128xf32> to vector<8x32xf32>
    %49 = arith.mulf %46, %28 : vector<8x32xf32>
    %50 = arith.mulf %45, %47 : vector<8x32xf32>
    %51 = arith.addf %49, %50 : vector<8x32xf32>
    %52 = math.tanh %51 : vector<8x32xf32>
    %53 = arith.mulf %48, %52 : vector<8x32xf32>
    %54 = arith.index_cast %34 : i32 to index
    %c0_19 = arith.constant 0 : index
    %55 = vector.load %arg10[%54, %c0_19] : memref<64x32xf32, #tpu.memory_space<vmem>>, vector<8x32xf32>
    tpu.vector_store %arg10[%54, %c0_19], %53 {strides = array<i32>} : memref<64x32xf32, #tpu.memory_space<vmem>>, vector<8x32xf32>,
    %c2_i32 = arith.constant 2 : i32
    %c8_i32_20 = arith.constant 8 : i32
    %56 = arith.muli %c2_i32, %c8_i32_20 : i32
    %57 = tpu.assume_multiple %56, 8 : i32
    %58 = arith.index_cast %57 : i32 to index
    %c0_21 = arith.constant 0 : index
    %59 = vector.load %arg9[%58, %c0_21] : memref<64x128xf32, #tpu.memory_space<vmem>>, vector<8x128xf32>
    %cst_22 = arith.constant dense<0.000000e+00> : vector<8x128xf32>
    %60 = tpu.matmul %53, %7, %cst_22 {dimension_numbers = #tpu.dot_dimension_numbers<[1], [0], [0], [1], [0, 0, 1, 1], [], []>} : vector<8x32xf32>, vector<32x128xf32>, vector<8x128xf32> -> vector<8x128xf32>
    %61 = arith.addf %59, %60 : vector<8x128xf32>
    %62 = arith.negf %61 : vector<8x128xf32>
    %63 = math.exp %62 : vector<8x128xf32>
    %cst_23 = arith.constant 1.000000e+00 : f32
    %64 = vector.broadcast %cst_23 : f32 to vector<8x128xf32>
    %65 = arith.addf %64, %63 : vector<8x128xf32>
    %66 = arith.divf %64, %65 : vector<8x128xf32>
    %67 = math.tanh %61 : vector<8x128xf32>
    %68 = vector.extract_strided_slice %66 {offsets = [0, 0], sizes = [8, 32], strides = [1, 1]} : vector<8x128xf32> to vector<8x32xf32>
    %69 = vector.extract_strided_slice %66 {offsets = [0, 32], sizes = [8, 32], strides = [1, 1]} : vector<8x128xf32> to vector<8x32xf32>
    %70 = vector.extract_strided_slice %67 {offsets = [0, 64], sizes = [8, 32], strides = [1, 1]} : vector<8x128xf32> to vector<8x32xf32>
    %71 = vector.extract_strided_slice %66 {offsets = [0, 96], sizes = [8, 32], strides = [1, 1]} : vector<8x128xf32> to vector<8x32xf32>
    %72 = arith.mulf %69, %51 : vector<8x32xf32>
    %73 = arith.mulf %68, %70 : vector<8x32xf32>
    %74 = arith.addf %72, %73 : vector<8x32xf32>
    %75 = math.tanh %74 : vector<8x32xf32>
    %76 = arith.mulf %71, %75 : vector<8x32xf32>
    %77 = arith.index_cast %57 : i32 to index
    %c0_24 = arith.constant 0 : index
    %78 = vector.load %arg10[%77, %c0_24] : memref<64x32xf32, #tpu.memory_space<vmem>>, vector<8x32xf32>
    tpu.vector_store %arg10[%77, %c0_24], %76 {strides = array<i32>} : memref<64x32xf32, #tpu.memory_space<vmem>>, vector<8x32xf32>,
    %c3_i32 = arith.constant 3 : i32
    %c8_i32_25 = arith.constant 8 : i32
    %79 = arith.muli %c3_i32, %c8_i32_25 : i32
    %80 = tpu.assume_multiple %79, 8 : i32
    %81 = arith.index_cast %80 : i32 to index
    %c0_26 = arith.constant 0 : index
    %82 = vector.load %arg9[%81, %c0_26] : memref<64x128xf32, #tpu.memory_space<vmem>>, vector<8x128xf32>
    %cst_27 = arith.constant dense<0.000000e+00> : vector<8x128xf32>
    %83 = tpu.matmul %76, %7, %cst_27 {dimension_numbers = #tpu.dot_dimension_numbers<[1], [0], [0], [1], [0, 0, 1, 1], [], []>} : vector<8x32xf32>, vector<32x128xf32>, vector<8x128xf32> -> vector<8x128xf32>
    %84 = arith.addf %82, %83 : vector<8x128xf32>
    %85 = arith.negf %84 : vector<8x128xf32>
    %86 = math.exp %85 : vector<8x128xf32>
    %cst_28 = arith.constant 1.000000e+00 : f32
    %87 = vector.broadcast %cst_28 : f32 to vector<8x128xf32>
    %88 = arith.addf %87, %86 : vector<8x128xf32>
    %89 = arith.divf %87, %88 : vector<8x128xf32>
    %90 = math.tanh %84 : vector<8x128xf32>
    %91 = vector.extract_strided_slice %89 {offsets = [0, 0], sizes = [8, 32], strides = [1, 1]} : vector<8x128xf32> to vector<8x32xf32>
    %92 = vector.extract_strided_slice %89 {offsets = [0, 32], sizes = [8, 32], strides = [1, 1]} : vector<8x128xf32> to vector<8x32xf32>
    %93 = vector.extract_strided_slice %90 {offsets = [0, 64], sizes = [8, 32], strides = [1, 1]} : vector<8x128xf32> to vector<8x32xf32>
    %94 = vector.extract_strided_slice %89 {offsets = [0, 96], sizes = [8, 32], strides = [1, 1]} : vector<8x128xf32> to vector<8x32xf32>
    %95 = arith.mulf %92, %74 : vector<8x32xf32>
    %96 = arith.mulf %91, %93 : vector<8x32xf32>
    %97 = arith.addf %95, %96 : vector<8x32xf32>
    %98 = math.tanh %97 : vector<8x32xf32>
    %99 = arith.mulf %94, %98 : vector<8x32xf32>
    %100 = arith.index_cast %80 : i32 to index
    %c0_29 = arith.constant 0 : index
    %101 = vector.load %arg10[%100, %c0_29] : memref<64x32xf32, #tpu.memory_space<vmem>>, vector<8x32xf32>
    tpu.vector_store %arg10[%100, %c0_29], %99 {strides = array<i32>} : memref<64x32xf32, #tpu.memory_space<vmem>>, vector<8x32xf32>,
    %c4_i32 = arith.constant 4 : i32
    %c8_i32_30 = arith.constant 8 : i32
    %102 = arith.muli %c4_i32, %c8_i32_30 : i32
    %103 = tpu.assume_multiple %102, 8 : i32
    %104 = arith.index_cast %103 : i32 to index
    %c0_31 = arith.constant 0 : index
    %105 = vector.load %arg9[%104, %c0_31] : memref<64x128xf32, #tpu.memory_space<vmem>>, vector<8x128xf32>
    %cst_32 = arith.constant dense<0.000000e+00> : vector<8x128xf32>
    %106 = tpu.matmul %99, %7, %cst_32 {dimension_numbers = #tpu.dot_dimension_numbers<[1], [0], [0], [1], [0, 0, 1, 1], [], []>} : vector<8x32xf32>, vector<32x128xf32>, vector<8x128xf32> -> vector<8x128xf32>
    %107 = arith.addf %105, %106 : vector<8x128xf32>
    %108 = arith.negf %107 : vector<8x128xf32>
    %109 = math.exp %108 : vector<8x128xf32>
    %cst_33 = arith.constant 1.000000e+00 : f32
    %110 = vector.broadcast %cst_33 : f32 to vector<8x128xf32>
    %111 = arith.addf %110, %109 : vector<8x128xf32>
    %112 = arith.divf %110, %111 : vector<8x128xf32>
    %113 = math.tanh %107 : vector<8x128xf32>
    %114 = vector.extract_strided_slice %112 {offsets = [0, 0], sizes = [8, 32], strides = [1, 1]} : vector<8x128xf32> to vector<8x32xf32>
    %115 = vector.extract_strided_slice %112 {offsets = [0, 32], sizes = [8, 32], strides = [1, 1]} : vector<8x128xf32> to vector<8x32xf32>
    %116 = vector.extract_strided_slice %113 {offsets = [0, 64], sizes = [8, 32], strides = [1, 1]} : vector<8x128xf32> to vector<8x32xf32>
    %117 = vector.extract_strided_slice %112 {offsets = [0, 96], sizes = [8, 32], strides = [1, 1]} : vector<8x128xf32> to vector<8x32xf32>
    %118 = arith.mulf %115, %97 : vector<8x32xf32>
    %119 = arith.mulf %114, %116 : vector<8x32xf32>
    %120 = arith.addf %118, %119 : vector<8x32xf32>
    %121 = math.tanh %120 : vector<8x32xf32>
    %122 = arith.mulf %117, %121 : vector<8x32xf32>
    %123 = arith.index_cast %103 : i32 to index
    %c0_34 = arith.constant 0 : index
    %124 = vector.load %arg10[%123, %c0_34] : memref<64x32xf32, #tpu.memory_space<vmem>>, vector<8x32xf32>
    tpu.vector_store %arg10[%123, %c0_34], %122 {strides = array<i32>} : memref<64x32xf32, #tpu.memory_space<vmem>>, vector<8x32xf32>,
    %c5_i32 = arith.constant 5 : i32
    %c8_i32_35 = arith.constant 8 : i32
    %125 = arith.muli %c5_i32, %c8_i32_35 : i32
    %126 = tpu.assume_multiple %125, 8 : i32
    %127 = arith.index_cast %126 : i32 to index
    %c0_36 = arith.constant 0 : index
    %128 = vector.load %arg9[%127, %c0_36] : memref<64x128xf32, #tpu.memory_space<vmem>>, vector<8x128xf32>
    %cst_37 = arith.constant dense<0.000000e+00> : vector<8x128xf32>
    %129 = tpu.matmul %122, %7, %cst_37 {dimension_numbers = #tpu.dot_dimension_numbers<[1], [0], [0], [1], [0, 0, 1, 1], [], []>} : vector<8x32xf32>, vector<32x128xf32>, vector<8x128xf32> -> vector<8x128xf32>
    %130 = arith.addf %128, %129 : vector<8x128xf32>
    %131 = arith.negf %130 : vector<8x128xf32>
    %132 = math.exp %131 : vector<8x128xf32>
    %cst_38 = arith.constant 1.000000e+00 : f32
    %133 = vector.broadcast %cst_38 : f32 to vector<8x128xf32>
    %134 = arith.addf %133, %132 : vector<8x128xf32>
    %135 = arith.divf %133, %134 : vector<8x128xf32>
    %136 = math.tanh %130 : vector<8x128xf32>
    %137 = vector.extract_strided_slice %135 {offsets = [0, 0], sizes = [8, 32], strides = [1, 1]} : vector<8x128xf32> to vector<8x32xf32>
    %138 = vector.extract_strided_slice %135 {offsets = [0, 32], sizes = [8, 32], strides = [1, 1]} : vector<8x128xf32> to vector<8x32xf32>
    %139 = vector.extract_strided_slice %136 {offsets = [0, 64], sizes = [8, 32], strides = [1, 1]} : vector<8x128xf32> to vector<8x32xf32>
    %140 = vector.extract_strided_slice %135 {offsets = [0, 96], sizes = [8, 32], strides = [1, 1]} : vector<8x128xf32> to vector<8x32xf32>
    %141 = arith.mulf %138, %120 : vector<8x32xf32>
    %142 = arith.mulf %137, %139 : vector<8x32xf32>
    %143 = arith.addf %141, %142 : vector<8x32xf32>
    %144 = math.tanh %143 : vector<8x32xf32>
    %145 = arith.mulf %140, %144 : vector<8x32xf32>
    %146 = arith.index_cast %126 : i32 to index
    %c0_39 = arith.constant 0 : index
    %147 = vector.load %arg10[%146, %c0_39] : memref<64x32xf32, #tpu.memory_space<vmem>>, vector<8x32xf32>
    tpu.vector_store %arg10[%146, %c0_39], %145 {strides = array<i32>} : memref<64x32xf32, #tpu.memory_space<vmem>>, vector<8x32xf32>,
    %c6_i32 = arith.constant 6 : i32
    %c8_i32_40 = arith.constant 8 : i32
    %148 = arith.muli %c6_i32, %c8_i32_40 : i32
    %149 = tpu.assume_multiple %148, 8 : i32
    %150 = arith.index_cast %149 : i32 to index
    %c0_41 = arith.constant 0 : index
    %151 = vector.load %arg9[%150, %c0_41] : memref<64x128xf32, #tpu.memory_space<vmem>>, vector<8x128xf32>
    %cst_42 = arith.constant dense<0.000000e+00> : vector<8x128xf32>
    %152 = tpu.matmul %145, %7, %cst_42 {dimension_numbers = #tpu.dot_dimension_numbers<[1], [0], [0], [1], [0, 0, 1, 1], [], []>} : vector<8x32xf32>, vector<32x128xf32>, vector<8x128xf32> -> vector<8x128xf32>
    %153 = arith.addf %151, %152 : vector<8x128xf32>
    %154 = arith.negf %153 : vector<8x128xf32>
    %155 = math.exp %154 : vector<8x128xf32>
    %cst_43 = arith.constant 1.000000e+00 : f32
    %156 = vector.broadcast %cst_43 : f32 to vector<8x128xf32>
    %157 = arith.addf %156, %155 : vector<8x128xf32>
    %158 = arith.divf %156, %157 : vector<8x128xf32>
    %159 = math.tanh %153 : vector<8x128xf32>
    %160 = vector.extract_strided_slice %158 {offsets = [0, 0], sizes = [8, 32], strides = [1, 1]} : vector<8x128xf32> to vector<8x32xf32>
    %161 = vector.extract_strided_slice %158 {offsets = [0, 32], sizes = [8, 32], strides = [1, 1]} : vector<8x128xf32> to vector<8x32xf32>
    %162 = vector.extract_strided_slice %159 {offsets = [0, 64], sizes = [8, 32], strides = [1, 1]} : vector<8x128xf32> to vector<8x32xf32>
    %163 = vector.extract_strided_slice %158 {offsets = [0, 96], sizes = [8, 32], strides = [1, 1]} : vector<8x128xf32> to vector<8x32xf32>
    %164 = arith.mulf %161, %143 : vector<8x32xf32>
    %165 = arith.mulf %160, %162 : vector<8x32xf32>
    %166 = arith.addf %164, %165 : vector<8x32xf32>
    %167 = math.tanh %166 : vector<8x32xf32>
    %168 = arith.mulf %163, %167 : vector<8x32xf32>
    %169 = arith.index_cast %149 : i32 to index
    %c0_44 = arith.constant 0 : index
    %170 = vector.load %arg10[%169, %c0_44] : memref<64x32xf32, #tpu.memory_space<vmem>>, vector<8x32xf32>
    tpu.vector_store %arg10[%169, %c0_44], %168 {strides = array<i32>} : memref<64x32xf32, #tpu.memory_space<vmem>>, vector<8x32xf32>,
    %c7_i32 = arith.constant 7 : i32
    %c8_i32_45 = arith.constant 8 : i32
    %171 = arith.muli %c7_i32, %c8_i32_45 : i32
    %172 = tpu.assume_multiple %171, 8 : i32
    %173 = arith.index_cast %172 : i32 to index
    %c0_46 = arith.constant 0 : index
    %174 = vector.load %arg9[%173, %c0_46] : memref<64x128xf32, #tpu.memory_space<vmem>>, vector<8x128xf32>
    %cst_47 = arith.constant dense<0.000000e+00> : vector<8x128xf32>
    %175 = tpu.matmul %168, %7, %cst_47 {dimension_numbers = #tpu.dot_dimension_numbers<[1], [0], [0], [1], [0, 0, 1, 1], [], []>} : vector<8x32xf32>, vector<32x128xf32>, vector<8x128xf32> -> vector<8x128xf32>
    %176 = arith.addf %174, %175 : vector<8x128xf32>
    %177 = arith.negf %176 : vector<8x128xf32>
    %178 = math.exp %177 : vector<8x128xf32>
    %cst_48 = arith.constant 1.000000e+00 : f32
    %179 = vector.broadcast %cst_48 : f32 to vector<8x128xf32>
    %180 = arith.addf %179, %178 : vector<8x128xf32>
    %181 = arith.divf %179, %180 : vector<8x128xf32>
    %182 = math.tanh %176 : vector<8x128xf32>
    %183 = vector.extract_strided_slice %181 {offsets = [0, 0], sizes = [8, 32], strides = [1, 1]} : vector<8x128xf32> to vector<8x32xf32>
    %184 = vector.extract_strided_slice %181 {offsets = [0, 32], sizes = [8, 32], strides = [1, 1]} : vector<8x128xf32> to vector<8x32xf32>
    %185 = vector.extract_strided_slice %182 {offsets = [0, 64], sizes = [8, 32], strides = [1, 1]} : vector<8x128xf32> to vector<8x32xf32>
    %186 = vector.extract_strided_slice %181 {offsets = [0, 96], sizes = [8, 32], strides = [1, 1]} : vector<8x128xf32> to vector<8x32xf32>
    %187 = arith.mulf %184, %166 : vector<8x32xf32>
    %188 = arith.mulf %183, %185 : vector<8x32xf32>
    %189 = arith.addf %187, %188 : vector<8x32xf32>
    %190 = math.tanh %189 : vector<8x32xf32>
    %191 = arith.mulf %186, %190 : vector<8x32xf32>
    %192 = arith.index_cast %172 : i32 to index
    %c0_49 = arith.constant 0 : index
    %193 = vector.load %arg10[%192, %c0_49] : memref<64x32xf32, #tpu.memory_space<vmem>>, vector<8x32xf32>
    tpu.vector_store %arg10[%192, %c0_49], %191 {strides = array<i32>} : memref<64x32xf32, #tpu.memory_space<vmem>>, vector<8x32xf32>,
    %c8_i32_50 = arith.constant 8 : i32
    %c0_51 = arith.constant 0 : index
    %c0_52 = arith.constant 0 : index
    %194 = vector.load %arg8[%c0_51, %c0_52] : memref<16x32xf32, #tpu.memory_space<vmem>>, vector<8x32xf32>
    tpu.vector_store %arg8[%c0_51, %c0_52], %191 {strides = array<i32>} : memref<16x32xf32, #tpu.memory_space<vmem>>, vector<8x32xf32>,
    %c8 = arith.constant 8 : index
    %c0_53 = arith.constant 0 : index
    %195 = vector.load %arg8[%c8, %c0_53] : memref<16x32xf32, #tpu.memory_space<vmem>>, vector<8x32xf32>
    tpu.vector_store %arg8[%c8, %c0_53], %189 {strides = array<i32>} : memref<16x32xf32, #tpu.memory_space<vmem>>, vector<8x32xf32>,
    %c0_54 = arith.constant 0 : index
    %c0_55 = arith.constant 0 : index
    %196 = vector.load %arg10[%c0_54, %c0_55] : memref<64x32xf32, #tpu.memory_space<vmem>>, vector<64x32xf32>
    %c0_56 = arith.constant 0 : index
    %c0_57 = arith.constant 0 : index
    %197 = vector.load %arg5[%c0_56, %c0_57] : memref<32x32xf32, #tpu.memory_space<vmem>>, vector<32x32xf32>
    %cst_58 = arith.constant dense<0.000000e+00> : vector<64x32xf32>
    %198 = tpu.matmul %196, %197, %cst_58 {dimension_numbers = #tpu.dot_dimension_numbers<[1], [0], [0], [1], [0, 0, 1, 1], [], []>} : vector<64x32xf32>, vector<32x32xf32>, vector<64x32xf32> -> vector<64x32xf32>
    %c0_59 = arith.constant 0 : index
    %c0_60 = arith.constant 0 : index
    %199 = vector.load %arg6[%c0_59, %c0_60] : memref<1x32xf32, #tpu.memory_space<vmem>>, vector<1x32xf32>
    %200 = vector.broadcast %199 : vector<1x32xf32> to vector<64x32xf32>
    %201 = arith.addf %198, %200 : vector<64x32xf32>
    %c0_61 = arith.constant 0 : index
    %c0_62 = arith.constant 0 : index
    %202 = vector.load %arg7[%c0_61, %c0_62] : memref<64x32xf32, #tpu.memory_space<vmem>>, vector<64x32xf32>
    tpu.vector_store %arg7[%c0_61, %c0_62], %201 {strides = array<i32>} : memref<64x32xf32, #tpu.memory_space<vmem>>, vector<64x32xf32>,
    return
  }
  func.func @transform_0(%arg0: i32) -> (i32, i32) {
    %c0_i32 = arith.constant 0 : i32
    %c0_i32_0 = arith.constant 0 : i32
    %c0_i32_1 = arith.constant 0 : i32
    return %c0_i32, %c0_i32_0 : i32, i32
  }
  func.func @transform_1(%arg0: i32) -> (i32, i32) {
    %c0_i32 = arith.constant 0 : i32
    %c0_i32_0 = arith.constant 0 : i32
    %c0_i32_1 = arith.constant 0 : i32
    return %c0_i32, %c0_i32_0 : i32, i32
  }
  func.func @transform_2(%arg0: i32) -> (i32, i32) {
    %c0_i32 = arith.constant 0 : i32
    %c0_i32_0 = arith.constant 0 : i32
    %c0_i32_1 = arith.constant 0 : i32
    return %c0_i32, %c0_i32_0 : i32, i32
  }
  func.func @transform_3(%arg0: i32) -> (i32, i32) {
    %c0_i32 = arith.constant 0 : i32
    %c0_i32_0 = arith.constant 0 : i32
    %c0_i32_1 = arith.constant 0 : i32
    return %c0_i32, %c0_i32_0 : i32, i32
  }
  func.func @transform_4(%arg0: i32) -> (i32, i32) {
    %c0_i32 = arith.constant 0 : i32
    %c0_i32_0 = arith.constant 0 : i32
    %c0_i32_1 = arith.constant 0 : i32
    return %c0_i32, %c0_i32_0 : i32, i32
  }
  func.func @transform_5(%arg0: i32) -> (i32, i32) {
    %c0_i32 = arith.constant 0 : i32
    %c0_i32_0 = arith.constant 0 : i32
    %c0_i32_1 = arith.constant 0 : i32
    return %c0_i32, %c0_i32_0 : i32, i32
  }
  func.func @transform_6(%arg0: i32) -> (i32, i32) {
    %c0_i32 = arith.constant 0 : i32
    %c0_i32_0 = arith.constant 0 : i32
    %c0_i32_1 = arith.constant 0 : i32
    return %c0_i32, %c0_i32_0 : i32, i32
  }
  func.func @transform_7(%arg0: i32) -> (i32, i32) {
    %c0_i32 = arith.constant 0 : i32
    %c0_i32_0 = arith.constant 0 : i32
    %c0_i32_1 = arith.constant 0 : i32
    return %c0_i32, %c0_i32_0 : i32, i32
  }
}

</mosaic_0001>

<bundles_post_ra>
// kernel: tpu_custom_call.1
= control target key start
LH: loop header
LB: loop body
LE: loop exit
PB: predicated region body
PF: predicated region fallthrough
CT: control target
= control target key end

     0   :  { %s1201_s0 = inlined_call_operand.vmem [shape: f32[64,32], index: 0, kind: input, shape index: {}]   ;;  %s1202_s1 = inlined_call_operand.vmem [shape: f32[32,128], index: 1, kind: input, shape index: {}]   ;;  %s1203_s2 = inlined_call_operand.vmem [shape: f32[32,128], index: 2, kind: input, shape index: {}]   ;;  %s1204_s3 = inlined_call_operand.vmem [shape: f32[1,128], index: 3, kind: input, shape index: {}]   ;;  %s1205_s4 = inlined_call_operand.vmem [shape: f32[32,32], index: 4, kind: input, shape index: {}]   ;;  %s1206_s5 = inlined_call_operand.vmem [shape: f32[1,32], index: 5, kind: input, shape index: {}]   ;;  %s1207_s6 = inlined_call_operand.vmem [shape: f32[64,32], index: 6, kind: output, shape index: {0}]   ;;  %s1208_s7 = inlined_call_operand.hbm [shape: f32[16,32], index: 7, kind: output, shape index: {1}]  }
   0x1   :  { %v37_v0 = vld [vmem:[%s1202_s1 + $0x18] sm:$0xff]  ;;  %v36_v1 = vld [vmem:[%s1202_s1 + $0x10] sm:$0xff]  ;;  %v35_v3 = vld [vmem:[%s1202_s1 + $0x8] sm:$0xff] }
   0x2   :  { %811 = vmatpush.msra.mxu2 %v37_v0  ;;  %v974_v2 = vld [vmem:[%s1203_s2 + $0x18] sm:$0xff]  ;;  %79 = vmatpush.msra.mxu0 %v37_v0  ;;  %v984_v4 = vld [vmem:[%s1203_s2 + $0x10] sm:$0xff]  ;;  %v34_v5 = vld [vmem:[%s1202_s1] sm:$0xff] }
   0x3   :  { %271 = vmatpush.msra.mxu3 %v974_v2  ;;  %339 = vmatpush.msra.mxu1 %v974_v2 }
   0x4   :  { %812 = vmatpush.msra.mxu2 %v36_v1  ;;  %80 = vmatpush.msra.mxu0 %v36_v1 }
   0x5   :  { %272 = vmatpush.msra.mxu3 %v984_v4  ;;  %340 = vmatpush.msra.mxu1 %v984_v4 }
   0x6   :  { %13 = vsyncpa [#allocation5], 0  ;;  %813 = vmatpush.msra.mxu2 %v35_v3  ;;  %v32_v6 = vld [vmem:[%s1201_s0 + $0x30] sm:$0xff]  ;;  %vm42_vm0 = vcmask 261120   ;;  %v997_v7 = vld [vmem:[%s1203_s2 + $0x8] sm:$0xff]  ;;  %81 = vmatpush.msra.mxu0 %v35_v3  ;;  %v918_v11 = vmov 0.0  }
   0x7   :  { %v26_v8 = vld [vmem:[%s1201_s0] sm:$0xff]  ;;  %273 = vmatpush.msra.mxu3 %v997_v7  ;;  %341 = vmatpush.msra.mxu1 %v997_v7  ;;  %v33_v10 = vld [vmem:[%s1201_s0 + $0x38] sm:$0xff]  ;;  %s919_s23 = smov 64   ;;  %v27_v41 = vld [vmem:[%s1201_s0 + $0x8] sm:$0xff]  ;;  %s921_s8 = smov 96  }
   0x8   :  { %814 = vmatpush.msra.mxu2 %v34_v5  ;;  %82 = vmatpush.msra.mxu0 %v34_v5  ;;  %v1008_v9 = vld [vmem:[%s1203_s2] sm:$0xff]  ;;  %v28_v5 = vld [vmem:[%s1201_s0 + $0x10] sm:$0xff]  ;;  %s922_s9 = smov [#allocation4]   ;;  %s923_s13 = smov 128  }
   0x9   :  { %786 = vmatmul.msk.f32.vlgmr.msra.gmra.mxu2 %vm42_vm0, %v32_v6  ;;  %780 = vmatmul.msk.f32.vlgmr.msra.gmra.mxu0 %vm42_vm0, %v26_v8  ;;  %v1044_v15 = vld [vmem:[%s1204_s3] ss:$0 sm:$0xff]  ;;  %s920_s3 = smov 32   ;;  %s764_s10 = sshll.u32 %s922_s9, 4  ;;  %s765_s10 = int_to_ptr.vmem [resolvable:$true] %s764_s10 }
   0xa   :  { %136 = vmatpush.msrb.mxu2 %v974_v2  ;;  %274 = vmatpush.msra.mxu3 %v1008_v9  ;;  %s924_s14 = smov 8  }
   0xb   :  { %342 = vmatpush.msra.mxu1 %v1008_v9 }
   0xc   :  { %475 = vmatpush.msrb.mxu3 %v974_v2  ;;  %137 = vmatpush.msrb.mxu2 %v984_v4 }
   0xd   :  { %543 = vmatpush.msrb.mxu1 %v974_v2 }
   0xe   :  { %476 = vmatpush.msrb.mxu3 %v984_v4  ;;  %138 = vmatpush.msrb.mxu2 %v997_v7 }
   0xf   :  { %544 = vmatpush.msrb.mxu1 %v984_v4 }
  0x10   :  { %477 = vmatpush.msrb.mxu3 %v997_v7  ;;  %139 = vmatpush.msrb.mxu2 %v1008_v9 }
  0x11   :  { %545 = vmatpush.msrb.mxu1 %v997_v7  ;;  %787 = vmatmul.msk.f32.gmra.mxu2 %vm42_vm0, %v33_v10 }
  0x12   :  { %478 = vmatpush.msrb.mxu3 %v1008_v9  ;;  %203 = vmatpush.msra.mxu2 %v974_v2 }
  0x13   :  { %546 = vmatpush.msrb.mxu1 %v1008_v9  ;;  %781 = vmatmul.msk.f32.gmra.mxu0 %vm42_vm0, %v27_v41 }
  0x14   :  { %204 = vmatpush.msra.mxu2 %v984_v4 }
  0x16   :  { %205 = vmatpush.msra.mxu2 %v997_v7 }
  0x18   :  { %206 = vmatpush.msra.mxu2 %v1008_v9 }
  0x19   :  { %140 = vmatmul.f32.vlgmr.msrb.gmra.mxu2 %v918_v11 }
  0x1a   :  { %407 = vmatpush.msrb.mxu2 %v974_v2 }
  0x1b   :  { %782 = vmatmul.msk.f32.gmra.mxu0 %vm42_vm0, %v28_v5 }
  0x1c   :  { %408 = vmatpush.msrb.mxu2 %v984_v4 }
  0x1e   :  { %409 = vmatpush.msrb.mxu2 %v997_v7 }
  0x20   :  { %410 = vmatpush.msrb.mxu2 %v1008_v9 }
  0x86   :  { %v84_v14 = vpop.f32.mrf.mxu0 }
  0x87   :  { %v85_v16 = vadd.f32 %v1044_v15, %v84_v14 }
  0x8c   :  { %v1037_v12 = vpop.f32.mrf.mxu2 }
  0x90   :  { %v87_v43 = vpop.f32.mrf.mxu0 }
  0x91   :  { %v88_v44 = vadd.f32 %v1044_v15, %v87_v43 }
  0x94   :  { %v1039_v13 = vpop.f32.mrf.mxu2 }
  0x9c   :  { %v141_v17 = vpop.f32.mrf.mxu2 }
  0x9d   :  { %v144_v18 = vadd.f32 %v141_v17, %v85_v16 }
  0x9f   :  { %828 = vtanh.f32 %v144_v18  ;;  %v788_v20 = vmul.f32 -1.442695, %v144_v18 }
  0xa1   :  { %830 = vpow2.f32 %v788_v20 }
  0xa5   :  { %v829_v19 = vpop.eup %828 }
  0xa6   :  { %167 = vrot.lane.b32.xlu0 %v829_v19, %s919_s23 }
  0xa7   :  { %v831_v21 = vpop.eup %830 }
  0xa8   :  { %v148_v22 = vadd.f32 1.0, %v831_v21 }
  0xaa   :  { %832 = vrcp.f32 %v148_v22  ;;  %v160_v28 = vand.u32 2147483648, %v148_v22  ;;  %vm154_vm2 = vweird.f32 %v148_v22  ;;  %v158_v29 = vand.u32 2147483647, %v148_v22 }
  0xac   :  { %v161_v31 = vor.u32 1.1754944e-38, %v160_v28  ;;  %vm159_vm4 = vcmp.eq.f32.partialorder %v158_v29, 8.507059e+37 }
  0xb0   :  { %v833_v23 = vpop.eup %832 }
  0xb1   :  { %v150_v24 = vmul.f32 %v833_v23, %v148_v22  ;;  %vm155_vm1 = vweird.f32 %v833_v23 }
  0xb2   :  { %vm156_vm3 = vmor %vm154_vm2, %vm155_vm1 }
  0xb3   :  { %v151_v25 = vsub.f32 1.0, %v150_v24 }
  0xb5   :  { %v152_v26 = vmul.f32 %v833_v23, %v151_v25 }
  0xb7   :  { %v153_v27 = vadd.f32 %v833_v23, %v152_v26 }
  0xb9   :  { %v157_v30 = vsel %vm156_vm3, %v833_v23, %v153_v27 }
  0xba   :  { %v162_v33 = vsel %vm159_vm4, %v161_v31, %v157_v30 }
  0xbb   :  { %v165_v35 = vmul.f32 0.0, %v162_v33 }
 0x118   :  { %v168_v32 = vpop.permute.xlu0 %167 }
 0x119   :  { %v170_v34 = vmul.f32 %v168_v32, %v162_v33 }
 0x11b   :  { %172 = vrot.lane.b32.xlu0 %v170_v34, %s920_s3  ;;  %v29_v34 = vld [vmem:[%s1201_s0 + $0x18] sm:$0xff] }
 0x11c   :  { %783 = vmatmul.msk.f32.gmra.mxu0 %vm42_vm0, %v29_v34  ;;  %v678_v34 = vld [vmem:[%s1205_s4 + $0x8] sm:$0xff] }
 0x18d   :  { %v173_v36 = vpop.permute.xlu0 %172 }
 0x18e   :  { %v175_v37 = vadd.f32 %v173_v36, %v165_v35 }
 0x190   :  { %834 = vtanh.f32 %v175_v37 }
 0x196   :  { %v835_v38 = vpop.eup %834 }
 0x197   :  { %178 = vrot.lane.b32.xlu1 %v835_v38, %s919_s23 }
 0x209   :  { %v179_v39 = vpop.permute.xlu1 %178 }
 0x20a   :  { %v181_v40 = vmul.f32 %v179_v39, %v162_v33 }
 0x20c   :  { %183 = vrot.lane.b32.xlu1 %v181_v40, %s920_s3 }
 0x27e   :  { %v184_v42 = vpop.permute.xlu1 %183 }
 0x27f   :  { %186 = vst.msk [vmem:[#allocation3] sm:$0xff] %vm42_vm0, %v184_v42  ;;  %789 = vmatmul.msk.f32.vlgmr.msra.gmra.mxu2 %vm42_vm0, %v184_v42 }
 0x280   :  { %611 = vmatpush.msra.mxu2 %v974_v2 }
 0x282   :  { %612 = vmatpush.msra.mxu2 %v984_v4 }
 0x284   :  { %613 = vmatpush.msra.mxu2 %v997_v7  ;;  %v90_v7 = vpop.f32.mrf.mxu0 }
 0x285   :  { %v91_v8 = vadd.f32 %v1044_v15, %v90_v7 }
 0x286   :  { %614 = vmatpush.msra.mxu2 %v1008_v9 }
 0x28c   :  { %v93_v38 = vpop.f32.mrf.mxu0 }
 0x28d   :  { %v94_v39 = vadd.f32 %v1044_v15, %v93_v38 }
 0x302   :  { %v208_v45 = vpop.f32.mrf.mxu2 }
 0x303   :  { %v211_v46 = vadd.f32 %v208_v45, %v88_v44 }
 0x305   :  { %836 = vtanh.f32 %v211_v46  ;;  %v790_v48 = vmul.f32 -1.442695, %v211_v46 }
 0x307   :  { %838 = vpow2.f32 %v790_v48 }
 0x30b   :  { %v837_v47 = vpop.eup %836 }
 0x30c   :  { %234 = vrot.lane.b32.xlu2 %v837_v47, %s919_s23 }
 0x30d   :  { %v839_v49 = vpop.eup %838 }
 0x30e   :  { %v215_v50 = vadd.f32 1.0, %v839_v49 }
 0x310   :  { %840 = vrcp.f32 %v215_v50  ;;  %v227_v56 = vand.u32 2147483648, %v215_v50  ;;  %vm221_vm6 = vweird.f32 %v215_v50  ;;  %v225_v57 = vand.u32 2147483647, %v215_v50 }
 0x312   :  { %v228_v59 = vor.u32 1.1754944e-38, %v227_v56  ;;  %vm226_vm8 = vcmp.eq.f32.partialorder %v225_v57, 8.507059e+37 }
 0x316   :  { %v841_v51 = vpop.eup %840 }
 0x317   :  { %v217_v52 = vmul.f32 %v841_v51, %v215_v50  ;;  %vm222_vm5 = vweird.f32 %v841_v51 }
 0x318   :  { %vm223_vm7 = vmor %vm221_vm6, %vm222_vm5 }
 0x319   :  { %v218_v53 = vsub.f32 1.0, %v217_v52 }
 0x31b   :  { %v219_v54 = vmul.f32 %v841_v51, %v218_v53 }
 0x31d   :  { %v220_v55 = vadd.f32 %v841_v51, %v219_v54 }
 0x31f   :  { %v224_v58 = vsel %vm223_vm7, %v841_v51, %v220_v55 }
 0x320   :  { %v229_v61 = vsel %vm226_vm8, %v228_v59, %v224_v58 }
 0x321   :  { %v232_v63 = vmul.f32 %v229_v61, %v175_v37 }
 0x366   :  { %v235_v60 = vpop.permute.xlu2 %234 }
 0x367   :  { %v237_v62 = vmul.f32 %v235_v60, %v229_v61 }
 0x369   :  { %239 = vrot.lane.b32.xlu2 %v237_v62, %s920_s3 }
 0x3c3   :  { %v240_v0 = vpop.permute.xlu2 %239 }
 0x3c4   :  { %v242_v1 = vadd.f32 %v240_v0, %v232_v63  ;;  %v30_v0 = vld [vmem:[%s1201_s0 + $0x20] sm:$0xff] }
 0x3c5   :  { %784 = vmatmul.msk.f32.gmra.mxu0 %vm42_vm0, %v30_v0 }
 0x3c6   :  { %842 = vtanh.f32 %v242_v1 }
 0x3cc   :  { %v843_v2 = vpop.eup %842 }
 0x3cd   :  { %245 = vrot.lane.b32.xlu0 %v843_v2, %s919_s23 }
 0x43f   :  { %v246_v3 = vpop.permute.xlu0 %245 }
 0x440   :  { %v248_v4 = vmul.f32 %v246_v3, %v229_v61 }
 0x442   :  { %250 = vrot.lane.b32.xlu1 %v248_v4, %s920_s3  ;;  %v96_v2 = vpop.f32.mrf.mxu0 }
 0x443   :  { %v97_v3 = vadd.f32 %v1044_v15, %v96_v2 }
 0x4b4   :  { %v251_v6 = vpop.permute.xlu1 %250 }
 0x4b5   :  { %254 = vst.msk [vmem:[#allocation3 + $0x8] sm:$0xff] %vm42_vm0, %v251_v6  ;;  %791 = vmatmul.msk.f32.vlgmr.msra.gmra.mxu3 %vm42_vm0, %v251_v6 }
 0x538   :  { %v276_v9 = vpop.f32.mrf.mxu3 }
 0x539   :  { %v279_v10 = vadd.f32 %v276_v9, %v91_v8 }
 0x53b   :  { %844 = vtanh.f32 %v279_v10  ;;  %v792_v14 = vmul.f32 -1.442695, %v279_v10 }
 0x53d   :  { %846 = vpow2.f32 %v792_v14 }
 0x541   :  { %v845_v11 = vpop.eup %844 }
 0x542   :  { %302 = vrot.lane.b32.xlu2 %v845_v11, %s919_s23 }
 0x543   :  { %v847_v16 = vpop.eup %846 }
 0x544   :  { %v283_v17 = vadd.f32 1.0, %v847_v16 }
 0x546   :  { %848 = vrcp.f32 %v283_v17  ;;  %v295_v23 = vand.u32 2147483648, %v283_v17  ;;  %vm289_vm10 = vweird.f32 %v283_v17  ;;  %v293_v24 = vand.u32 2147483647, %v283_v17 }
 0x548   :  { %v296_v26 = vor.u32 1.1754944e-38, %v295_v23  ;;  %vm294_vm12 = vcmp.eq.f32.partialorder %v293_v24, 8.507059e+37 }
 0x54c   :  { %v849_v18 = vpop.eup %848 }
 0x54d   :  { %v285_v19 = vmul.f32 %v849_v18, %v283_v17  ;;  %vm290_vm9 = vweird.f32 %v849_v18 }
 0x54e   :  { %vm291_vm11 = vmor %vm289_vm10, %vm290_vm9 }
 0x54f   :  { %v286_v20 = vsub.f32 1.0, %v285_v19 }
 0x551   :  { %v287_v21 = vmul.f32 %v849_v18, %v286_v20 }
 0x553   :  { %v288_v22 = vadd.f32 %v849_v18, %v287_v21 }
 0x555   :  { %v292_v25 = vsel %vm291_vm11, %v849_v18, %v288_v22 }
 0x556   :  { %v297_v28 = vsel %vm294_vm12, %v296_v26, %v292_v25 }
 0x557   :  { %v300_v30 = vmul.f32 %v297_v28, %v242_v1 }
 0x59c   :  { %v303_v27 = vpop.permute.xlu2 %302 }
 0x59d   :  { %v305_v29 = vmul.f32 %v303_v27, %v297_v28 }
 0x59f   :  { %307 = vrot.lane.b32.xlu0 %v305_v29, %s920_s3 }
 0x611   :  { %v308_v31 = vpop.permute.xlu0 %307 }
 0x612   :  { %v310_v32 = vadd.f32 %v308_v31, %v300_v30  ;;  %v680_v31 = vld [vmem:[%s1205_s4 + $0x18] sm:$0xff] }
 0x613   :  { %815 = vmatpush.msra.mxu3 %v680_v31 }
 0x614   :  { %850 = vtanh.f32 %v310_v32 }
 0x61a   :  { %v851_v33 = vpop.eup %850 }
 0x61b   :  { %313 = vrot.lane.b32.xlu1 %v851_v33, %s919_s23  ;;  %v31_v33 = vld [vmem:[%s1201_s0 + $0x28] sm:$0xff] }
 0x61c   :  { %785 = vmatmul.msk.f32.gmra.mxu0 %vm42_vm0, %v31_v33 }
 0x68d   :  { %v314_v35 = vpop.permute.xlu1 %313 }
 0x68e   :  { %v316_v36 = vmul.f32 %v314_v35, %v297_v28  ;;  %v677_v35 = vld [vmem:[%s1205_s4] sm:$0xff] }
 0x690   :  { %318 = vrot.lane.b32.xlu2 %v316_v36, %s920_s3 }
 0x699   :  { %v99_v38 = vpop.f32.mrf.mxu0 }
 0x6ea   :  { %v319_v37 = vpop.permute.xlu2 %318 }
 0x6eb   :  { %322 = vst.msk [vmem:[#allocation3 + $0x10] sm:$0xff] %vm42_vm0, %v319_v37  ;;  %793 = vmatmul.msk.f32.vlgmr.msra.gmra.mxu1 %vm42_vm0, %v319_v37 }
 0x6ec   :  { %721 = vmatpush.msra.mxu1 %v680_v31 }
 0x768   :  { %v344_v40 = vpop.f32.mrf.mxu1 }
 0x769   :  { %v347_v41 = vadd.f32 %v344_v40, %v94_v39  ;;  %v100_v39 = vadd.f32 %v1044_v15, %v99_v38 }
 0x76b   :  { %852 = vtanh.f32 %v347_v41  ;;  %v794_v43 = vmul.f32 -1.442695, %v347_v41 }
 0x76d   :  { %854 = vpow2.f32 %v794_v43 }
 0x771   :  { %v853_v42 = vpop.eup %852 }
 0x772   :  { %370 = vrot.lane.b32.xlu0 %v853_v42, %s919_s23  ;;  %v1122_v42 = vld [vmem:[%s1206_s5] ss:$0 sm:$0xff] }
 0x773   :  { %v855_v44 = vpop.eup %854 }
 0x774   :  { %v351_v45 = vadd.f32 1.0, %v855_v44 }
 0x776   :  { %856 = vrcp.f32 %v351_v45  ;;  %v363_v51 = vand.u32 2147483648, %v351_v45  ;;  %vm357_vm14 = vweird.f32 %v351_v45  ;;  %v361_v52 = vand.u32 2147483647, %v351_v45 }
 0x778   :  { %v364_v54 = vor.u32 1.1754944e-38, %v363_v51  ;;  %vm362_vm1 = vcmp.eq.f32.partialorder %v361_v52, 8.507059e+37 }
 0x77c   :  { %v857_v46 = vpop.eup %856 }
 0x77d   :  { %v353_v47 = vmul.f32 %v857_v46, %v351_v45  ;;  %vm358_vm13 = vweird.f32 %v857_v46 }
 0x77e   :  { %vm359_vm15 = vmor %vm357_vm14, %vm358_vm13 }
 0x77f   :  { %v354_v48 = vsub.f32 1.0, %v353_v47 }
 0x781   :  { %v355_v49 = vmul.f32 %v857_v46, %v354_v48 }
 0x783   :  { %v356_v50 = vadd.f32 %v857_v46, %v355_v49 }
 0x785   :  { %v360_v53 = vsel %vm359_vm15, %v857_v46, %v356_v50 }
 0x786   :  { %v365_v56 = vsel %vm362_vm1, %v364_v54, %v360_v53 }
 0x787   :  { %v368_v58 = vmul.f32 %v365_v56, %v310_v32  ;;  %v679_v32 = vld [vmem:[%s1205_s4 + $0x10] sm:$0xff] }
 0x788   :  { %816 = vmatpush.msra.mxu3 %v679_v32  ;;  %722 = vmatpush.msra.mxu1 %v679_v32 }
 0x78a   :  { %817 = vmatpush.msra.mxu3 %v678_v34  ;;  %723 = vmatpush.msra.mxu1 %v678_v34 }
 0x78c   :  { %818 = vmatpush.msra.mxu3 %v677_v35  ;;  %724 = vmatpush.msra.mxu1 %v677_v35 }
 0x7e4   :  { %v371_v55 = vpop.permute.xlu0 %370 }
 0x7e5   :  { %v373_v57 = vmul.f32 %v371_v55, %v365_v56 }
 0x7e7   :  { %375 = vrot.lane.b32.xlu1 %v373_v57, %s920_s3 }
 0x859   :  { %v376_v59 = vpop.permute.xlu1 %375 }
 0x85a   :  { %v378_v60 = vadd.f32 %v376_v59, %v368_v58 }
 0x85c   :  { %858 = vtanh.f32 %v378_v60 }
 0x862   :  { %v859_v61 = vpop.eup %858 }
 0x863   :  { %381 = vrot.lane.b32.xlu2 %v859_v61, %s919_s23 }
 0x8bd   :  { %v382_v62 = vpop.permute.xlu2 %381 }
 0x8be   :  { %v384_v63 = vmul.f32 %v382_v62, %v365_v56 }
 0x8c0   :  { %386 = vrot.lane.b32.xlu0 %v384_v63, %s920_s3 }
 0x932   :  { %v387_v1 = vpop.permute.xlu0 %386 }
 0x933   :  { %390 = vst.msk [vmem:[#allocation3 + $0x18] sm:$0xff] %vm42_vm0, %v387_v1  ;;  %795 = vmatmul.msk.f32.vlgmr.msrb.gmra.mxu2 %vm42_vm0, %v387_v1 }
 0x9b6   :  { %v412_v4 = vpop.f32.mrf.mxu2 }
 0x9b7   :  { %v415_v5 = vadd.f32 %v412_v4, %v97_v3  ;;  %v669_v4 = vld [vmem:[#allocation3] sm:$0xff] }
 0x9b9   :  { %860 = vtanh.f32 %v415_v5  ;;  %v796_v7 = vmul.f32 -1.442695, %v415_v5 }
 0x9bb   :  { %862 = vpow2.f32 %v796_v7  ;;  %v671_v7 = vld [vmem:[#allocation3 + $0x10] sm:$0xff] }
 0x9bf   :  { %v861_v6 = vpop.eup %860 }
 0x9c0   :  { %438 = vrot.lane.b32.xlu1 %v861_v6, %s919_s23  ;;  %v670_v6 = vld [vmem:[#allocation3 + $0x8] sm:$0xff] }
 0x9c1   :  { %v863_v8 = vpop.eup %862 }
 0x9c2   :  { %v419_v9 = vadd.f32 1.0, %v863_v8  ;;  %v672_v8 = vld [vmem:[#allocation3 + $0x18] sm:$0xff] }
 0x9c4   :  { %864 = vrcp.f32 %v419_v9  ;;  %v431_v18 = vand.u32 2147483648, %v419_v9  ;;  %vm425_vm3 = vweird.f32 %v419_v9  ;;  %v429_v19 = vand.u32 2147483647, %v419_v9 }
 0x9c6   :  { %v432_v21 = vor.u32 1.1754944e-38, %v431_v18  ;;  %vm430_vm5 = vcmp.eq.f32.partialorder %v429_v19, 8.507059e+37 }
 0x9ca   :  { %v865_v10 = vpop.eup %864 }
 0x9cb   :  { %v421_v11 = vmul.f32 %v865_v10, %v419_v9  ;;  %vm426_vm2 = vweird.f32 %v865_v10  ;;  %v103_v9 = vadd.f32 %v1044_v15, %v1037_v12 }
 0x9cc   :  { %vm427_vm4 = vmor %vm425_vm3, %vm426_vm2 }
 0x9cd   :  { %v422_v14 = vsub.f32 1.0, %v421_v11 }
 0x9cf   :  { %v423_v16 = vmul.f32 %v865_v10, %v422_v14 }
 0x9d1   :  { %v424_v17 = vadd.f32 %v865_v10, %v423_v16 }
 0x9d3   :  { %v428_v20 = vsel %vm427_vm4, %v865_v10, %v424_v17 }
 0x9d4   :  { %v433_v23 = vsel %vm430_vm5, %v432_v21, %v428_v20 }
 0x9d5   :  { %v436_v25 = vmul.f32 %v433_v23, %v378_v60 }
 0xa32   :  { %v439_v22 = vpop.permute.xlu1 %438 }
 0xa33   :  { %v441_v24 = vmul.f32 %v439_v22, %v433_v23 }
 0xa35   :  { %443 = vrot.lane.b32.xlu2 %v441_v24, %s920_s3 }
 0xa8f   :  { %v444_v26 = vpop.permute.xlu2 %443 }
 0xa90   :  { %v446_v27 = vadd.f32 %v444_v26, %v436_v25 }
 0xa92   :  { %866 = vtanh.f32 %v446_v27 }
 0xa98   :  { %v867_v28 = vpop.eup %866 }
 0xa99   :  { %449 = vrot.lane.b32.xlu0 %v867_v28, %s919_s23 }
 0xb0b   :  { %v450_v29 = vpop.permute.xlu0 %449 }
 0xb0c   :  { %v452_v30 = vmul.f32 %v450_v29, %v433_v23 }
 0xb0e   :  { %454 = vrot.lane.b32.xlu1 %v452_v30, %s920_s3 }
 0xb80   :  { %v455_v36 = vpop.permute.xlu1 %454 }
 0xb81   :  { %458 = vst.msk [vmem:[#allocation3 + $0x20] sm:$0xff] %vm42_vm0, %v455_v36  ;;  %797 = vmatmul.msk.f32.vlgmr.msrb.gmra.mxu3 %vm42_vm0, %v455_v36 }
 0xb88   :  { %v673_v37 = vld [vmem:[#allocation3 + $0x20] sm:$0xff] }
 0xb89   :  { %807 = vmatmul.msk.f32.vlgmr.msra.gmra.mxu3 %vm42_vm0, %v673_v37 }
 0xc04   :  { %v480_v40 = vpop.f32.mrf.mxu3 }
 0xc05   :  { %v483_v41 = vadd.f32 %v480_v40, %v100_v39 }
 0xc07   :  { %868 = vtanh.f32 %v483_v41  ;;  %v798_v46 = vmul.f32 -1.442695, %v483_v41 }
 0xc09   :  { %870 = vpow2.f32 %v798_v46 }
 0xc0c   :  { %v738_v43 = vpop.f32.mrf.mxu3 }
 0xc0d   :  { %v869_v44 = vpop.eup %868  ;;  %v739_v45 = vadd.f32 %v1122_v42, %v738_v43 }
 0xc0e   :  { %506 = vrot.lane.b32.xlu2 %v869_v44, %s919_s23 }
 0xc0f   :  { %754 = vst.msk [vmem:[%s1207_s6 + $0x20] sm:$0xff] %vm42_vm0, %v739_v45  ;;  %v871_v47 = vpop.eup %870 }
 0xc10   :  { %v487_v48 = vadd.f32 1.0, %v871_v47 }
 0xc12   :  { %872 = vrcp.f32 %v487_v48  ;;  %v499_v54 = vand.u32 2147483648, %v487_v48  ;;  %vm493_vm7 = vweird.f32 %v487_v48  ;;  %v497_v55 = vand.u32 2147483647, %v487_v48 }
 0xc14   :  { %v500_v57 = vor.u32 1.1754944e-38, %v499_v54  ;;  %vm498_vm9 = vcmp.eq.f32.partialorder %v497_v55, 8.507059e+37 }
 0xc18   :  { %v873_v49 = vpop.eup %872 }
 0xc19   :  { %v489_v50 = vmul.f32 %v873_v49, %v487_v48  ;;  %vm494_vm6 = vweird.f32 %v873_v49 }
 0xc1a   :  { %vm495_vm8 = vmor %vm493_vm7, %vm494_vm6 }
 0xc1b   :  { %v490_v51 = vsub.f32 1.0, %v489_v50 }
 0xc1d   :  { %v491_v52 = vmul.f32 %v873_v49, %v490_v51 }
 0xc1f   :  { %v492_v53 = vadd.f32 %v873_v49, %v491_v52 }
 0xc21   :  { %v496_v56 = vsel %vm495_vm8, %v873_v49, %v492_v53  ;;  %v106_v49 = vadd.f32 %v1044_v15, %v1039_v13 }
 0xc22   :  { %v501_v59 = vsel %vm498_vm9, %v500_v57, %v496_v56 }
 0xc23   :  { %v504_v61 = vmul.f32 %v501_v59, %v446_v27 }
 0xc68   :  { %v507_v58 = vpop.permute.xlu2 %506 }
 0xc69   :  { %v509_v60 = vmul.f32 %v507_v58, %v501_v59 }
 0xc6b   :  { %511 = vrot.lane.b32.xlu0 %v509_v60, %s920_s3 }
 0xcdd   :  { %v512_v62 = vpop.permute.xlu0 %511 }
 0xcde   :  { %v1131_v63 = vadd.f32 %v512_v62, %v504_v61 }
 0xce0   :  { %874 = vtanh.f32 %v1131_v63 }
 0xce6   :  { %v875_v0 = vpop.eup %874 }
 0xce7   :  { %517 = vrot.lane.b32.xlu1 %v875_v0, %s919_s23 }
 0xd59   :  { %v518_v1 = vpop.permute.xlu1 %517 }
 0xd5a   :  { %v520_v2 = vmul.f32 %v518_v1, %v501_v59 }
 0xd5c   :  { %522 = vrot.lane.b32.xlu2 %v520_v2, %s920_s3 }
 0xdb6   :  { %v523_v3 = vpop.permute.xlu2 %522 }
 0xdb7   :  { %526 = vst.msk [vmem:[#allocation3 + $0x28] sm:$0xff] %vm42_vm0, %v523_v3  ;;  %799 = vmatmul.msk.f32.vlgmr.msrb.gmra.mxu1 %vm42_vm0, %v523_v3 }
 0xdbe   :  { %v674_v5 = vld [vmem:[#allocation3 + $0x28] sm:$0xff] }
 0xdbf   :  { %803 = vmatmul.msk.f32.vlgmr.msra.gmra.mxu1 %vm42_vm0, %v669_v4  ;;  %808 = vmatmul.msk.f32.gmra.mxu3 %vm42_vm0, %v674_v5 }
 0xdc7   :  { %804 = vmatmul.msk.f32.gmra.mxu1 %vm42_vm0, %v670_v6 }
 0xdcf   :  { %805 = vmatmul.msk.f32.gmra.mxu1 %vm42_vm0, %v671_v7 }
 0xdd7   :  { %806 = vmatmul.msk.f32.gmra.mxu1 %vm42_vm0, %v672_v8 }
 0xe34   :  { %v548_v10 = vpop.f32.mrf.mxu1 }
 0xe35   :  { %v551_v11 = vadd.f32 %v548_v10, %v103_v9 }
 0xe37   :  { %876 = vtanh.f32 %v551_v11  ;;  %v800_v25 = vmul.f32 -1.442695, %v551_v11 }
 0xe39   :  { %878 = vpow2.f32 %v800_v25 }
 0xe3c   :  { %v726_v14 = vpop.f32.mrf.mxu1 }
 0xe3d   :  { %v877_v16 = vpop.eup %876  ;;  %v727_v17 = vadd.f32 %v1122_v42, %v726_v14 }
 0xe3e   :  { %574 = vrot.lane.b32.xlu0 %v877_v16, %s919_s23 }
 0xe3f   :  { %750 = vst.msk [vmem:[%s1207_s6] sm:$0xff] %vm42_vm0, %v727_v17  ;;  %v879_v26 = vpop.eup %878 }
 0xe40   :  { %v555_v27 = vadd.f32 1.0, %v879_v26 }
 0xe42   :  { %v741_v18 = vpop.f32.mrf.mxu3  ;;  %880 = vrcp.f32 %v555_v27  ;;  %v567_v33 = vand.u32 2147483648, %v555_v27  ;;  %vm561_vm11 = vweird.f32 %v555_v27  ;;  %v565_v34 = vand.u32 2147483647, %v555_v27 }
 0xe43   :  { %v742_v19 = vadd.f32 %v1122_v42, %v741_v18 }
 0xe44   :  { %v729_v20 = vpop.f32.mrf.mxu1  ;;  %v568_v36 = vor.u32 1.1754944e-38, %v567_v33  ;;  %vm566_vm13 = vcmp.eq.f32.partialorder %v565_v34, 8.507059e+37 }
 0xe45   :  { %755 = vst.msk [vmem:[%s1207_s6 + $0x28] sm:$0xff] %vm42_vm0, %v742_v19  ;;  %v730_v12 = vadd.f32 %v1122_v42, %v729_v20 }
 0xe47   :  { %751 = vst.msk [vmem:[%s1207_s6 + $0x8] sm:$0xff] %vm42_vm0, %v730_v12 }
 0xe48   :  { %v881_v28 = vpop.eup %880 }
 0xe49   :  { %v557_v29 = vmul.f32 %v881_v28, %v555_v27  ;;  %vm562_vm10 = vweird.f32 %v881_v28 }
 0xe4a   :  { %vm563_vm12 = vmor %vm561_vm11, %vm562_vm10 }
 0xe4b   :  { %v558_v30 = vsub.f32 1.0, %v557_v29 }
 0xe4c   :  { %v732_v21 = vpop.f32.mrf.mxu1 }
 0xe4d   :  { %v733_v22 = vadd.f32 %v1122_v42, %v732_v21  ;;  %v559_v31 = vmul.f32 %v881_v28, %v558_v30 }
 0xe4f   :  { %752 = vst.msk [vmem:[%s1207_s6 + $0x10] sm:$0xff] %vm42_vm0, %v733_v22  ;;  %v560_v32 = vadd.f32 %v881_v28, %v559_v31 }
 0xe51   :  { %v564_v35 = vsel %vm563_vm12, %v881_v28, %v560_v32 }
 0xe52   :  { %v569_v38 = vsel %vm566_vm13, %v568_v36, %v564_v35 }
 0xe53   :  { %v572_v40 = vmul.f32 %v569_v38, %v1131_v63 }
 0xe54   :  { %v735_v23 = vpop.f32.mrf.mxu1 }
 0xe55   :  { %v736_v24 = vadd.f32 %v1122_v42, %v735_v23 }
 0xe57   :  { %753 = vst.msk [vmem:[%s1207_s6 + $0x18] sm:$0xff] %vm42_vm0, %v736_v24 }
 0xeb0   :  { %v575_v37 = vpop.permute.xlu0 %574 }
 0xeb1   :  { %v577_v39 = vmul.f32 %v575_v37, %v569_v38 }
 0xeb3   :  { %579 = vrot.lane.b32.xlu1 %v577_v39, %s920_s3 }
 0xf25   :  { %v580_v41 = vpop.permute.xlu1 %579 }
 0xf26   :  { %v582_v43 = vadd.f32 %v580_v41, %v572_v40 }
 0xf28   :  { %882 = vtanh.f32 %v582_v43 }
 0xf2e   :  { %v883_v44 = vpop.eup %882 }
 0xf2f   :  { %585 = vrot.lane.b32.xlu2 %v883_v44, %s919_s23 }
 0xf89   :  { %v586_v45 = vpop.permute.xlu2 %585 }
 0xf8a   :  { %v588_v46 = vmul.f32 %v586_v45, %v569_v38 }
 0xf8c   :  { %590 = vrot.lane.b32.xlu0 %v588_v46, %s920_s3 }
 0xffe   :  { %v591_v47 = vpop.permute.xlu0 %590 }
 0xfff   :  { %594 = vst.msk [vmem:[#allocation3 + $0x30] sm:$0xff] %vm42_vm0, %v591_v47  ;;  %801 = vmatmul.msk.f32.vlgmr.msra.gmra.mxu2 %vm42_vm0, %v591_v47 }
0x1006   :  { %v675_v48 = vld [vmem:[#allocation3 + $0x30] sm:$0xff] }
0x1007   :  { %809 = vmatmul.msk.f32.gmra.mxu3 %vm42_vm0, %v675_v48 }
0x1082   :  { %v616_v50 = vpop.f32.mrf.mxu2 }
0x1083   :  { %v619_v51 = vadd.f32 %v616_v50, %v106_v49 }
0x1085   :  { %884 = vtanh.f32 %v619_v51  ;;  %v802_v55 = vmul.f32 -1.442695, %v619_v51 }
0x1087   :  { %886 = vpow2.f32 %v802_v55 }
0x108a   :  { %v744_v52 = vpop.f32.mrf.mxu3 }
0x108b   :  { %v885_v53 = vpop.eup %884  ;;  %v745_v54 = vadd.f32 %v1122_v42, %v744_v52 }
0x108c   :  { %642 = vrot.lane.b32.xlu1 %v885_v53, %s919_s23 }
0x108d   :  { %756 = vst.msk [vmem:[%s1207_s6 + $0x30] sm:$0xff] %vm42_vm0, %v745_v54  ;;  %v887_v56 = vpop.eup %886 }
0x108e   :  { %v623_v57 = vadd.f32 1.0, %v887_v56 }
0x1090   :  { %888 = vrcp.f32 %v623_v57  ;;  %v635_v61 = vand.u32 2147483648, %v623_v57  ;;  %vm629_vm15 = vweird.f32 %v623_v57  ;;  %v633_v62 = vand.u32 2147483647, %v623_v57 }
0x1092   :  { %v636_v0 = vor.u32 1.1754944e-38, %v635_v61  ;;  %vm634_vm2 = vcmp.eq.f32.partialorder %v633_v62, 8.507059e+37 }
0x1096   :  { %v889_v13 = vpop.eup %888 }
0x1097   :  { %v625_v15 = vmul.f32 %v889_v13, %v623_v57  ;;  %vm630_vm14 = vweird.f32 %v889_v13 }
0x1098   :  { %vm631_vm1 = vmor %vm629_vm15, %vm630_vm14 }
0x1099   :  { %v626_v58 = vsub.f32 1.0, %v625_v15 }
0x109b   :  { %v627_v59 = vmul.f32 %v889_v13, %v626_v58 }
0x109d   :  { %v628_v60 = vadd.f32 %v889_v13, %v627_v59 }
0x109f   :  { %v632_v63 = vsel %vm631_vm1, %v889_v13, %v628_v60 }
0x10a0   :  { %v637_v2 = vsel %vm634_vm2, %v636_v0, %v632_v63 }
0x10a1   :  { %v640_v4 = vmul.f32 %v637_v2, %v582_v43 }
0x10fe   :  { %v643_v1 = vpop.permute.xlu1 %642 }
0x10ff   :  { %v645_v3 = vmul.f32 %v643_v1, %v637_v2 }
0x1101   :  { %647 = vrot.lane.b32.xlu2 %v645_v3, %s920_s3 }
0x115b   :  { %v648_v5 = vpop.permute.xlu2 %647 }
0x115c   :  { %v650_v6 = vadd.f32 %v648_v5, %v640_v4 }
0x115e   :  { %890 = vtanh.f32 %v650_v6  ;;  %665 = vrot.lane.b32.xlu2 %v650_v6, %s921_s8 }
0x1164   :  { %v891_v7 = vpop.eup %890 }
0x1165   :  { %653 = vrot.lane.b32.xlu0 %v891_v7, %s919_s23  ;;  %s766_s23 = sshll.u32 %s1208_s7, 4  ;;  %s767_s23 = int_to_ptr.hbm [resolvable:$true] %s766_s23 }
0x11b8   :  { %v666_v8 = vpop.permute.xlu2 %665 }
0x11b9   :  { %668 = vst.msk [vmem:[#allocation4 + $0x8] sm:$0xff] %vm42_vm0, %v666_v8 }
0x11d7   :  { %v654_v9 = vpop.permute.xlu0 %653 }
0x11d8   :  { %v656_v10 = vmul.f32 %v654_v9, %v637_v2 }
0x11da   :  { %658 = vrot.lane.b32.xlu1 %v656_v10, %s920_s3 }
0x124c   :  { %v659_v11 = vpop.permute.xlu1 %658 }
0x124d   :  { %662 = vst.msk [vmem:[#allocation3 + $0x38] sm:$0xff] %vm42_vm0, %v659_v11 }
0x124e   :  { %663 = vst.msk [vmem:[#allocation4] sm:$0xff] %vm42_vm0, %v659_v11 }
0x124f   :  { %772 = dma.vmem_to_hbm [thread:$0]  %s765_s10, 256, %s767_s23, [#allocation5], %s923_s13, %s923_s13, %s924_s14  }
0x1254   :  { %v676_v14 = vld [vmem:[#allocation3 + $0x38] sm:$0xff] }
0x1255   :  { %810 = vmatmul.msk.f32.gmra.mxu3 %vm42_vm0, %v676_v14 }
0x12d8   :  { %v747_v16 = vpop.f32.mrf.mxu3 }
0x12d9   :  { %v748_v17 = vadd.f32 %v1122_v42, %v747_v16 }
0x12db   :  { %757 = vst.msk [vmem:[%s1207_s6 + $0x38] sm:$0xff] %vm42_vm0, %v748_v17 }
0x12dc   :  { %916 = dma.done.wait [#allocation5], 256  }
0x12dd   :  { %917 = vsyncadd [#allocation5], 4294967040 }
0x12de   :  { %779 = vsyncpa [#allocation5], 1 }

</bundles_post_ra>
